<compile_context>
chip_gen: v7x
topology: tpu7x:2x2x1
jax: 0.10.0
libtpu: 0.0.40
codegen_flags: <defaults>
</compile_context>

<pallas_src>
import functools
import math

import numpy as np
import jax
import jax.numpy as jnp
from jax.experimental import pallas as pl
from jax.experimental.pallas import tpu as pltpu

_TWO_PI = 2.0 * math.pi
# Taylor coefficients of sin(2*pi*z) through z**13 (odd terms only).
# Max truncation error over z in [-0.5, 0.5] (one full period) ~2.2e-5 abs.
_SIN_TURNS_COEFFS = tuple(
    float(((-1.0) ** k) * (_TWO_PI ** (2 * k + 1)) / math.factorial(2 * k + 1))
    for k in range(7))


def _sin_turns(u):
    """sin(2*pi*u) for u >= -0.5 via one floor-based range reduction plus a
    degree-13 odd polynomial.  VPU-only (no libm sin)."""
    z = u - jnp.floor(u + 0.5)          # z in [-0.5, 0.5]
    z2 = z * z
    c = _SIN_TURNS_COEFFS
    p = c[6]
    for k in (5, 4, 3, 2, 1, 0):        # unrolled Horner, stays fused per-vreg
        p = p * z2 + c[k]
    return p * z


def _pos_encode_kernel(yx_ref, inv_ty_ref, inv_tx_ref, phase_ref, out_ref, *,
                       num_pos_feats):
    # yx_ref:     (2, tS)  f32  row 0 = y embed, row 1 = x embed (flattened)
    # inv_t*_ref: (F, 1)   f32  (scale or 1) / (2*pi * temperature**expo)
    # phase_ref:  (F, 1)   f32  0.0 (sin) or 0.25 (cos), in turns
    # out_ref:    (2F, tS) out_dtype, channels-first, lane-dense spatial axis
    F = num_pos_feats
    y = yx_ref[0:1, :]
    x = yx_ref[1:2, :]
    inv_ty = inv_ty_ref[...]
    inv_tx = inv_tx_ref[...]
    phase = phase_ref[...]

    # angle (in turns) = inv_t * embed + phase; 1 mul + 1 add + poly-sin.
    # Direct slice writes (no concat); cast only at the store.
    out_ref[0:F, :] = _sin_turns(inv_ty * y + phase).astype(out_ref.dtype)
    out_ref[F:2 * F, :] = _sin_turns(inv_tx * x + phase).astype(out_ref.dtype)


def _round_up(v, m):
    return ((v + m - 1) // m) * m


def position_embedding_sine_hw(mask, *, num_pos_feats=64, temperatureH=10000,
                               temperatureW=10000, normalize=False, scale=None,
                               spatial_tile=4096, out_dtype=jnp.float32,
                               flatten_output=False):
    """mask: [B, H, W] bool (True = padded).

    Returns [B, 2*num_pos_feats, H, W] (module semantics), or with
    flatten_output=True the kernel-native lane-dense [B, 2*num_pos_feats, H*W].
    """
    if scale is not None and normalize is False:
        raise ValueError('normalize should be True if scale is passed')
    if scale is None:
        scale = 2 * math.pi

    B, H, W = mask.shape
    F = num_pos_feats
    HW = H * W

    # ---- cheap O(B*H*W) prep in XLA (~1/(2F) of the op's work/bytes) --------
    not_mask = 1.0 - mask.astype(jnp.float32)
    y_embed = jnp.cumsum(not_mask, axis=1)
    x_embed = jnp.cumsum(not_mask, axis=2)
    if normalize:
        eps = 1e-06
        # reciprocal-multiply: one reciprocal per row/column, not per element
        y_embed = y_embed * (1.0 / (y_embed[:, -1:, :] + eps))
        x_embed = x_embed * (1.0 / (x_embed[:, :, -1:] + eps))
    # One packed input -> a single per-step input DMA.
    yx = jnp.stack([y_embed.reshape(B, HW), x_embed.reshape(B, HW)], axis=1)

    # ---- per-feature constants in "turns" (1/(2*pi) and scale folded in) ----
    dim = np.arange(F, dtype=np.float64)
    expo = 2.0 * np.floor(dim / 2.0) / float(F)
    mult = (float(scale) if normalize else 1.0) / _TWO_PI
    inv_ty = jnp.asarray((mult / (float(temperatureH) ** expo)).reshape(F, 1),
                         dtype=jnp.float32)
    inv_tx = jnp.asarray((mult / (float(temperatureW) ** expo)).reshape(F, 1),
                         dtype=jnp.float32)
    # even feature -> sin (phase 0), odd feature -> cos (phase = 1/4 turn)
    phase = jnp.asarray(((dim % 2) * 0.25).reshape(F, 1), dtype=jnp.float32)

    # ---- spatial tile: lane-dense, <= spatial_tile, >= ~4 total grid steps --
    # (megacore occupancy on v7x; tiles kept multiples of 512 lanes so output
    #  stores are unmasked 8x128 tiles; last ragged tile handled by masking.)
    min_tiles = max(-(-4 // B), 1)                       # ceil(4 / B)
    tS = _round_up(max(pl.cdiv(HW, min_tiles), 1), 512)
    tS = min(tS, spatial_tile, _round_up(HW, 128))
    grid = (B, pl.cdiv(HW, tS))

    kernel = functools.partial(_pos_encode_kernel, num_pos_feats=F)

    pos_flat = pl.pallas_call(
        kernel,
        out_shape=jax.ShapeDtypeStruct((B, 2 * F, HW), out_dtype),
        grid=grid,
        in_specs=[
            pl.BlockSpec((None, 2, tS), lambda b, s: (b, 0, s)),   # yx
            pl.BlockSpec((F, 1), lambda b, s: (0, 0)),             # inv_ty (grid-invariant)
            pl.BlockSpec((F, 1), lambda b, s: (0, 0)),             # inv_tx
            pl.BlockSpec((F, 1), lambda b, s: (0, 0)),             # phase
        ],
        out_specs=pl.BlockSpec((None, 2 * F, tS), lambda b, s: (b, 0, s)),
        compiler_params=pltpu.CompilerParams(
            dimension_semantics=("parallel", "parallel"),
            # double-buffered (2F, tS) f32 out block + tiny inputs stays far
            # below this on v5e/v6e/v7x.
            vmem_limit_bytes=32 * 1024 * 1024),
    )(yx, inv_ty, inv_tx, phase)

    if flatten_output:
        return pos_flat
    # NCHW view for module parity.  NOTE: on TPU tiled layouts this reshape
    # may insert a relayout copy; perf-critical consumers should take the
    # flattened (B, 2F, HW) result (flatten_output=True) instead.
    return pos_flat.reshape(B, 2 * F, H, W)


def _reference(mask, *, num_pos_feats, temperatureH, temperatureW, normalize, scale):
    """Pure-JAX transcription of the PyTorch forward for verification."""
    not_mask = (~mask).astype(jnp.float32)
    y_embed = jnp.cumsum(not_mask, axis=1)
    x_embed = jnp.cumsum(not_mask, axis=2)
    if normalize:
        eps = 1e-06
        y_embed = y_embed / (y_embed[:, -1:, :] + eps) * scale
        x_embed = x_embed / (x_embed[:, :, -1:] + eps) * scale
    dim_t = jnp.arange(num_pos_feats, dtype=jnp.float32)
    dim_tx = temperatureW ** (2 * jnp.floor(dim_t / 2) / num_pos_feats)
    dim_ty = temperatureH ** (2 * jnp.floor(dim_t / 2) / num_pos_feats)
    pos_x = x_embed[:, :, :, None] / dim_tx
    pos_y = y_embed[:, :, :, None] / dim_ty
    B, H, W, F = pos_x.shape
    pos_x = jnp.stack((jnp.sin(pos_x[..., 0::2]), jnp.cos(pos_x[..., 1::2])),
                      axis=4).reshape(B, H, W, F)
    pos_y = jnp.stack((jnp.sin(pos_y[..., 0::2]), jnp.cos(pos_y[..., 1::2])),
                      axis=4).reshape(B, H, W, F)
    pos = jnp.concatenate((pos_y, pos_x), axis=3).transpose(0, 3, 1, 2)
    return pos


if __name__ == "__main__":
    key = jax.random.PRNGKey(0)
    k_x, k_m1, k_m2 = jax.random.split(key, 3)

    # ---- case 1: module-sized example (matches the PyTorch forward) --------
    B, C, H, W = 2, 4, 16, 16
    F = 64  # -> 128 output channels
    # x only provides device/dtype in the PyTorch module; the mask drives math.
    x = jax.random.normal(k_x, (B, C, H, W), dtype=jnp.float32)
    mask = jax.random.bernoulli(k_m1, 0.25, (B, H, W))   # True = padded

    cfg = dict(num_pos_feats=F, temperatureH=10000, temperatureW=10000,
               normalize=True, scale=None)
    pos = jax.jit(functools.partial(position_embedding_sine_hw, **cfg))(mask)
    pos = jax.block_until_ready(pos)
    ref = _reference(mask, **{**cfg, "scale": 2 * math.pi})
    assert pos.shape == (B, 2 * F, H, W), pos.shape
    assert pos.dtype == jnp.float32
    assert jnp.allclose(pos, ref, rtol=1e-5, atol=1e-4), \
        float(jnp.max(jnp.abs(pos - ref)))

    # ---- case 2: ragged last spatial tile + kernel-native flattened output --
    B2, H2, W2 = 1, 24, 24   # HW=576 -> tiles of 512 lanes, last tile ragged
    mask2 = jax.random.bernoulli(k_m2, 0.25, (B2, H2, W2))
    pos2 = jax.jit(functools.partial(position_embedding_sine_hw,
                                     flatten_output=True, **cfg))(mask2)
    pos2 = jax.block_until_ready(pos2)
    ref2 = _reference(mask2, **{**cfg, "scale": 2 * math.pi})
    assert pos2.shape == (B2, 2 * F, H2 * W2), pos2.shape
    assert jnp.allclose(pos2.reshape(B2, 2 * F, H2, W2), ref2,
                        rtol=1e-5, atol=1e-4), \
        float(jnp.max(jnp.abs(pos2.reshape(B2, 2 * F, H2, W2) - ref2)))

    # ---- case 3: normalize=False path (module default) ----------------------
    cfg3 = dict(num_pos_feats=F, temperatureH=10000, temperatureW=10000,
                normalize=False, scale=None)
    pos3 = jax.jit(functools.partial(position_embedding_sine_hw, **cfg3))(mask)
    pos3 = jax.block_until_ready(pos3)
    ref3 = _reference(mask, **{**cfg3, "scale": 2 * math.pi})
    assert jnp.allclose(pos3, ref3, rtol=1e-5, atol=1e-4), \
        float(jnp.max(jnp.abs(pos3 - ref3)))

    print("KERNEL_OK")
</pallas_src>

<mosaic_0001>
module attributes {stable_mosaic.version = 11 : i64} {
  func.func @_pos_encode_kernel(%arg0: i32, %arg1: i32, %arg2: memref<1x2x256xf32, #tpu.memory_space<vmem>>, %arg3: memref<64x1xf32, #tpu.memory_space<vmem>>, %arg4: memref<64x1xf32, #tpu.memory_space<vmem>>, %arg5: memref<64x1xf32, #tpu.memory_space<vmem>>, %arg6: memref<1x128x256xf32, #tpu.memory_space<vmem>>) attributes {dimension_semantics = [#tpu.dimension_semantics<parallel>, #tpu.dimension_semantics<parallel>], iteration_bounds = array<i64: 2, 1>, scalar_prefetch = 0 : i64, scratch_operands = 0 : i64, tpu.core_type = #tpu.core_type<tc>, window_params = [{transform_indices = @transform_0, window_bounds = array<i64: 1, 2, 256>}, {pipeline_mode = #tpu.pipeline_mode<synchronous>, transform_indices = @transform_1, window_bounds = array<i64: 64, 1>}, {pipeline_mode = #tpu.pipeline_mode<synchronous>, transform_indices = @transform_2, window_bounds = array<i64: 64, 1>}, {pipeline_mode = #tpu.pipeline_mode<synchronous>, transform_indices = @transform_3, window_bounds = array<i64: 64, 1>}, {transform_indices = @transform_4, window_bounds = array<i64: 1, 128, 256>}]} {
    %c0 = arith.constant 0 : index
    %c0_0 = arith.constant 0 : index
    %c0_1 = arith.constant 0 : index
    %0 = vector.load %arg2[%c0, %c0_0, %c0_1] : memref<1x2x256xf32, #tpu.memory_space<vmem>>, vector<1x1x256xf32>
    %1 = vector.shape_cast %0 : vector<1x1x256xf32> to vector<1x256xf32>
    %c0_2 = arith.constant 0 : index
    %c1 = arith.constant 1 : index
    %c0_3 = arith.constant 0 : index
    %2 = vector.load %arg2[%c0_2, %c1, %c0_3] : memref<1x2x256xf32, #tpu.memory_space<vmem>>, vector<1x1x256xf32>
    %3 = vector.shape_cast %2 : vector<1x1x256xf32> to vector<1x256xf32>
    %c0_4 = arith.constant 0 : index
    %c0_5 = arith.constant 0 : index
    %4 = vector.load %arg3[%c0_4, %c0_5] : memref<64x1xf32, #tpu.memory_space<vmem>>, vector<64x1xf32>
    %c0_6 = arith.constant 0 : index
    %c0_7 = arith.constant 0 : index
    %5 = vector.load %arg4[%c0_6, %c0_7] : memref<64x1xf32, #tpu.memory_space<vmem>>, vector<64x1xf32>
    %c0_8 = arith.constant 0 : index
    %c0_9 = arith.constant 0 : index
    %6 = vector.load %arg5[%c0_8, %c0_9] : memref<64x1xf32, #tpu.memory_space<vmem>>, vector<64x1xf32>
    %7 = vector.broadcast %4 : vector<64x1xf32> to vector<64x256xf32>
    %8 = vector.broadcast %1 : vector<1x256xf32> to vector<64x256xf32>
    %9 = arith.mulf %7, %8 : vector<64x256xf32>
    %10 = vector.broadcast %6 : vector<64x1xf32> to vector<64x256xf32>
    %11 = arith.addf %9, %10 : vector<64x256xf32>
    %cst = arith.constant 5.000000e-01 : f32
    %12 = vector.broadcast %cst : f32 to vector<64x256xf32>
    %13 = arith.addf %11, %12 : vector<64x256xf32>
    %14 = math.floor %13 : vector<64x256xf32>
    %15 = arith.subf %11, %14 : vector<64x256xf32>
    %16 = arith.mulf %15, %15 : vector<64x256xf32>
    %cst_10 = arith.constant 3.81995249 : f32
    %17 = vector.broadcast %cst_10 : f32 to vector<64x256xf32>
    %18 = arith.mulf %17, %16 : vector<64x256xf32>
    %cst_11 = arith.constant -15.0946426 : f32
    %19 = vector.broadcast %cst_11 : f32 to vector<64x256xf32>
    %20 = arith.addf %18, %19 : vector<64x256xf32>
    %21 = arith.mulf %20, %16 : vector<64x256xf32>
    %cst_12 = arith.constant 42.0586929 : f32
    %22 = vector.broadcast %cst_12 : f32 to vector<64x256xf32>
    %23 = arith.addf %21, %22 : vector<64x256xf32>
    %24 = arith.mulf %23, %16 : vector<64x256xf32>
    %cst_13 = arith.constant -76.7058563 : f32
    %25 = vector.broadcast %cst_13 : f32 to vector<64x256xf32>
    %26 = arith.addf %24, %25 : vector<64x256xf32>
    %27 = arith.mulf %26, %16 : vector<64x256xf32>
    %cst_14 = arith.constant 81.6052475 : f32
    %28 = vector.broadcast %cst_14 : f32 to vector<64x256xf32>
    %29 = arith.addf %27, %28 : vector<64x256xf32>
    %30 = arith.mulf %29, %16 : vector<64x256xf32>
    %cst_15 = arith.constant -4.134170e+01 : f32
    %31 = vector.broadcast %cst_15 : f32 to vector<64x256xf32>
    %32 = arith.addf %30, %31 : vector<64x256xf32>
    %33 = arith.mulf %32, %16 : vector<64x256xf32>
    %cst_16 = arith.constant 6.28318548 : f32
    %34 = vector.broadcast %cst_16 : f32 to vector<64x256xf32>
    %35 = arith.addf %33, %34 : vector<64x256xf32>
    %36 = arith.mulf %35, %15 : vector<64x256xf32>
    %c0_17 = arith.constant 0 : index
    %c0_18 = arith.constant 0 : index
    %c0_19 = arith.constant 0 : index
    %37 = vector.load %arg6[%c0_17, %c0_18, %c0_19] : memref<1x128x256xf32, #tpu.memory_space<vmem>>, vector<1x64x256xf32>
    %38 = vector.shape_cast %37 : vector<1x64x256xf32> to vector<64x256xf32>
    %39 = vector.shape_cast %36 : vector<64x256xf32> to vector<1x64x256xf32>
    tpu.vector_store %arg6[%c0_17, %c0_18, %c0_19], %39 {strides = array<i32>} : memref<1x128x256xf32, #tpu.memory_space<vmem>>, vector<1x64x256xf32>,
    %40 = vector.broadcast %5 : vector<64x1xf32> to vector<64x256xf32>
    %41 = vector.broadcast %3 : vector<1x256xf32> to vector<64x256xf32>
    %42 = arith.mulf %40, %41 : vector<64x256xf32>
    %43 = vector.broadcast %6 : vector<64x1xf32> to vector<64x256xf32>
    %44 = arith.addf %42, %43 : vector<64x256xf32>
    %cst_20 = arith.constant 5.000000e-01 : f32
    %45 = vector.broadcast %cst_20 : f32 to vector<64x256xf32>
    %46 = arith.addf %44, %45 : vector<64x256xf32>
    %47 = math.floor %46 : vector<64x256xf32>
    %48 = arith.subf %44, %47 : vector<64x256xf32>
    %49 = arith.mulf %48, %48 : vector<64x256xf32>
    %cst_21 = arith.constant 3.81995249 : f32
    %50 = vector.broadcast %cst_21 : f32 to vector<64x256xf32>
    %51 = arith.mulf %50, %49 : vector<64x256xf32>
    %cst_22 = arith.constant -15.0946426 : f32
    %52 = vector.broadcast %cst_22 : f32 to vector<64x256xf32>
    %53 = arith.addf %51, %52 : vector<64x256xf32>
    %54 = arith.mulf %53, %49 : vector<64x256xf32>
    %cst_23 = arith.constant 42.0586929 : f32
    %55 = vector.broadcast %cst_23 : f32 to vector<64x256xf32>
    %56 = arith.addf %54, %55 : vector<64x256xf32>
    %57 = arith.mulf %56, %49 : vector<64x256xf32>
    %cst_24 = arith.constant -76.7058563 : f32
    %58 = vector.broadcast %cst_24 : f32 to vector<64x256xf32>
    %59 = arith.addf %57, %58 : vector<64x256xf32>
    %60 = arith.mulf %59, %49 : vector<64x256xf32>
    %cst_25 = arith.constant 81.6052475 : f32
    %61 = vector.broadcast %cst_25 : f32 to vector<64x256xf32>
    %62 = arith.addf %60, %61 : vector<64x256xf32>
    %63 = arith.mulf %62, %49 : vector<64x256xf32>
    %cst_26 = arith.constant -4.134170e+01 : f32
    %64 = vector.broadcast %cst_26 : f32 to vector<64x256xf32>
    %65 = arith.addf %63, %64 : vector<64x256xf32>
    %66 = arith.mulf %65, %49 : vector<64x256xf32>
    %cst_27 = arith.constant 6.28318548 : f32
    %67 = vector.broadcast %cst_27 : f32 to vector<64x256xf32>
    %68 = arith.addf %66, %67 : vector<64x256xf32>
    %69 = arith.mulf %68, %48 : vector<64x256xf32>
    %c0_28 = arith.constant 0 : index
    %c64 = arith.constant 64 : index
    %c0_29 = arith.constant 0 : index
    %70 = vector.load %arg6[%c0_28, %c64, %c0_29] : memref<1x128x256xf32, #tpu.memory_space<vmem>>, vector<1x64x256xf32>
    %71 = vector.shape_cast %70 : vector<1x64x256xf32> to vector<64x256xf32>
    %72 = vector.shape_cast %69 : vector<64x256xf32> to vector<1x64x256xf32>
    tpu.vector_store %arg6[%c0_28, %c64, %c0_29], %72 {strides = array<i32>} : memref<1x128x256xf32, #tpu.memory_space<vmem>>, vector<1x64x256xf32>,
    return
  }
  func.func @transform_0(%arg0: i32, %arg1: i32) -> (i32, i32, i32) {
    %c0_i32 = arith.constant 0 : i32
    %c0_i32_0 = arith.constant 0 : i32
    return %arg0, %c0_i32, %arg1 : i32, i32, i32
  }
  func.func @transform_1(%arg0: i32, %arg1: i32) -> (i32, i32) {
    %c0_i32 = arith.constant 0 : i32
    %c0_i32_0 = arith.constant 0 : i32
    %c0_i32_1 = arith.constant 0 : i32
    return %c0_i32, %c0_i32_0 : i32, i32
  }
  func.func @transform_2(%arg0: i32, %arg1: i32) -> (i32, i32) {
    %c0_i32 = arith.constant 0 : i32
    %c0_i32_0 = arith.constant 0 : i32
    %c0_i32_1 = arith.constant 0 : i32
    return %c0_i32, %c0_i32_0 : i32, i32
  }
  func.func @transform_3(%arg0: i32, %arg1: i32) -> (i32, i32) {
    %c0_i32 = arith.constant 0 : i32
    %c0_i32_0 = arith.constant 0 : i32
    %c0_i32_1 = arith.constant 0 : i32
    return %c0_i32, %c0_i32_0 : i32, i32
  }
  func.func @transform_4(%arg0: i32, %arg1: i32) -> (i32, i32, i32) {
    %c0_i32 = arith.constant 0 : i32
    %c0_i32_0 = arith.constant 0 : i32
    return %arg0, %c0_i32, %arg1 : i32, i32, i32
  }
}

</mosaic_0001>

<bundles_post_ra>
// kernel: position_embedding_sine_hw.1
= control target key start
LH: loop header
LB: loop body
LE: loop exit
PB: predicated region body
PF: predicated region fallthrough
CT: control target
= control target key end

     0   :  { %s1224_s15 = smov 0   ;;  %s1226_s16 = smov 0   ;;  %s1913_s0 = inlined_call_operand.vmem [shape: f32[2,2,256], index: 0, kind: input, shape index: {}]   ;;  %s1914_s1 = inlined_call_operand.vmem [shape: f32[64,1], index: 1, kind: input, shape index: {}, may-alias: {1,2}]   ;;  %s1915_s2 = inlined_call_operand.vmem [shape: f32[64,1], index: 2, kind: input, shape index: {}, may-alias: {1,2}]   ;;  %s1916_s3 = inlined_call_operand.vmem [shape: f32[64,1], index: 3, kind: input, shape index: {}]   ;;  %s1917_s4 = inlined_call_operand.vmem [shape: f32[2,128,256], index: 4, kind: output, shape index: {}]  }
   0x1   :  { %s1228_s17 = smov 0  }
   0x2 LB: > { %s26_s18 = sadd.s32 1, %s1192_s16  ;;  %p1137_p0 = scmp.ge.s32.totalorder %s1196_s17, 1  ;;  %s1196_s17 = sphi %s1228_s17, %s14_s17   ;;  %s1192_s16 = sphi %s1226_s16, %s1919_s16   ;;  %s1188_s15 = sphi %s1224_s15, %s1918_s15  }
   0x3   : > { %p28_p1 = scmp.ge.s32.totalorder %s26_s18, 2  ;;  %p183_p2 = scmp.lt.s32.totalorder %s1196_s17, 3 }
   0x5   : > { %s1921_s18 = smov (%p28_p1, %s26_s18), 0  ;;  %p184_p3 = pnand %p1137_p0, %p183_p2 }
   0x6   : > { %v242_v0 = vld [vmem:[%s1914_s1 + $0x10] sm:$0xff] (!%p184_p3)  ;;  %v240_v1 = vld [vmem:[%s1914_s1] sm:$0xff] (!%p184_p3)  ;;  %v1198_v2 = vmov (!%p184_p3), 0   ;;  %v243_v3 = vld [vmem:[%s1914_s1 + $0x18] sm:$0xff] (!%p184_p3)  ;;  %p218_p4 = scmp.lt.s32.totalorder (!%p184_p3), %s1188_s15, 1  ;;  %v305_v25 = vlaneseq (!%p184_p3) }
   0x7   : > { %187 = sbr.rel (%p184_p3) target bundleno = 324 (0x144), region = 36  ;;  %1173 = vset.pattern.permute.xlu1 (!%p184_p3), %v1198_v2  ;;  %1172 = vset.pattern.permute.xlu0 (!%p184_p3), %v1198_v2  ;;  %v241_v4 = vld [vmem:[%s1914_s1 + $0x8] sm:$0xff] (!%p184_p3)  ;;  %v244_v6 = vld [vmem:[%s1914_s1 + $0x20] sm:$0xff] (!%p184_p3)  ;;  %v247_v7 = vld [vmem:[%s1914_s1 + $0x38] sm:$0xff] (!%p184_p3) }
   0x8   : > { %276 = vperm.xlu1 (!%p184_p3), %1173, %v242_v0   ;;  %266 = vperm.xlu0 (!%p184_p3), %1172, %v240_v1   ;;  %v245_v5 = vld [vmem:[%s1914_s1 + $0x28] sm:$0xff] (!%p184_p3)  ;;  %v246_v8 = vld [vmem:[%s1914_s1 + $0x30] sm:$0xff] (!%p184_p3)  ;;  %v248_v10 = vld [vmem:[%s1915_s2] sm:$0xff] (!%p184_p3)  ;;  %v306_v26 = vshrl.u32 (!%p184_p3), %v305_v25, 7 }
   0x9   : > { %v249_v9 = vld [vmem:[%s1915_s2 + $0x8] sm:$0xff] (!%p184_p3)  ;;  %v251_v11 = vld [vmem:[%s1915_s2 + $0x18] sm:$0xff] (!%p184_p3)  ;;  %v250_v12 = vld [vmem:[%s1915_s2 + $0x10] sm:$0xff] (!%p184_p3) }
   0xa   : > { %v253_v13 = vld [vmem:[%s1915_s2 + $0x28] sm:$0xff] (!%p184_p3)  ;;  %v252_v14 = vld [vmem:[%s1915_s2 + $0x20] sm:$0xff] (!%p184_p3)  ;;  %v255_v15 = vld [vmem:[%s1915_s2 + $0x38] sm:$0xff] (!%p184_p3)  ;;  %v307_v29 = vsub.s32 (!%p184_p3), 0, %v306_v26  ;;  %v311_v30 = vsub.s32 (!%p184_p3), 1, %v306_v26 }
   0xb   : > { %v254_v16 = vld [vmem:[%s1915_s2 + $0x30] sm:$0xff] (!%p184_p3)  ;;  %v257_v17 = vld [vmem:[%s1916_s3 + $0x8] sm:$0xff] (!%p184_p3)  ;;  %v256_v18 = vld [vmem:[%s1916_s3] sm:$0xff] (!%p184_p3) }
   0xc   : > { %281 = vperm.xlu1 (!%p184_p3), %1173, %v243_v3   ;;  %271 = vperm.xlu0 (!%p184_p3), %1172, %v241_v4   ;;  %v259_v19 = vld [vmem:[%s1916_s3 + $0x18] sm:$0xff] (!%p184_p3)  ;;  %v258_v20 = vld [vmem:[%s1916_s3 + $0x10] sm:$0xff] (!%p184_p3)  ;;  %v261_v21 = vld [vmem:[%s1916_s3 + $0x28] sm:$0xff] (!%p184_p3) }
   0xd   : > { %v260_v22 = vld [vmem:[%s1916_s3 + $0x20] sm:$0xff] (!%p184_p3)  ;;  %v263_v23 = vld [vmem:[%s1916_s3 + $0x38] sm:$0xff] (!%p184_p3)  ;;  %v262_v24 = vld [vmem:[%s1916_s3 + $0x30] sm:$0xff] (!%p184_p3) }
   0xe   : > { %s1923_s15 = smov (!%p218_p4, %s1188_s15), 1 }
   0xf   : > { %s1145_s23 = sshll.u32 %s1923_s15, 2  ;;  %s1146_s27 = sshll.u32 %s1923_s15, 8 }
  0x10   : > { %291 = vperm.xlu1 %1173, %v245_v5   ;;  %286 = vperm.xlu0 %1172, %v244_v6   ;;  %s225_s26 = scalar_lea.vmem %s1913_s0, %s1145_s23  ;;  %s1479_s29 = scalar_lea.vmem %s1917_s4, %s1146_s27 }
  0x11   : > { %v237_v31 = vld [vmem:[%s225_s26] ss:$2 sm:$0x3]  ;;  %v1142_v50 = vld [vmem:[%s225_s26 + $0x1] ss:$2 sm:$0x3] }
  0x12   : > { %v308_v34 = vrot.slane %v237_v31, %v307_v29  ;;  %v312_v35 = vrot.slane %v237_v31, %v311_v30  ;;  %v719_v53 = vrot.slane %v1142_v50, %v307_v29  ;;  %v723_v54 = vrot.slane %v1142_v50, %v311_v30 }
  0x14   : > { %301 = vperm.xlu1 %1173, %v247_v7   ;;  %296 = vperm.xlu0 %1172, %v246_v8  }
  0x18   : > { %682 = vperm.xlu1 %1173, %v249_v9   ;;  %677 = vperm.xlu0 %1172, %v248_v10  }
  0x1c   : > { %692 = vperm.xlu1 %1173, %v251_v11   ;;  %687 = vperm.xlu0 %1172, %v250_v12  }
  0x20   : > { %702 = vperm.xlu1 %1173, %v253_v13   ;;  %697 = vperm.xlu0 %1172, %v252_v14  }
  0x24   : > { %712 = vperm.xlu1 %1173, %v255_v15   ;;  %707 = vperm.xlu0 %1172, %v254_v16  }
  0x28   : > { %338 = vperm.xlu1 %1173, %v257_v17   ;;  %333 = vperm.xlu0 %1172, %v256_v18  }
  0x2c   : > { %348 = vperm.xlu1 %1173, %v259_v19   ;;  %343 = vperm.xlu0 %1172, %v258_v20  }
  0x30   : > { %358 = vperm.xlu1 %1173, %v261_v21   ;;  %353 = vperm.xlu0 %1172, %v260_v22  }
  0x34   : > { %368 = vperm.xlu1 %1173, %v263_v23   ;;  %363 = vperm.xlu0 %1172, %v262_v24  }
  0x87   : > { %v277_v27 = vpop.permute.xlu1 %276  ;;  %v267_v28 = vpop.permute.xlu0 %266 }
  0x88   : > { %v1348_v61 = vmul.f32 %v308_v34, %v277_v27  ;;  %v1350_v62 = vmul.f32 %v312_v35, %v277_v27  ;;  %v315_v63 = vmul.f32 %v308_v34, %v267_v28  ;;  %v316_v0 = vmul.f32 %v312_v35, %v267_v28 }
  0x8b   : > { %v282_v32 = vpop.permute.xlu1 %281  ;;  %v272_v33 = vpop.permute.xlu0 %271 }
  0x8c   : > { %v321_v7 = vmul.f32 %v308_v34, %v282_v32  ;;  %v322_v8 = vmul.f32 %v312_v35, %v282_v32  ;;  %v317_v9 = vmul.f32 %v308_v34, %v272_v33  ;;  %v318_v10 = vmul.f32 %v312_v35, %v272_v33 }
  0x8f   : > { %v292_v36 = vpop.permute.xlu1 %291  ;;  %v287_v37 = vpop.permute.xlu0 %286 }
  0x90   : > { %v1324_v38 = vmul.f32 %v308_v34, %v292_v36  ;;  %v1326_v39 = vmul.f32 %v312_v35, %v292_v36  ;;  %v1328_v40 = vmul.f32 %v308_v34, %v287_v37  ;;  %v1330_v41 = vmul.f32 %v312_v35, %v287_v37 }
  0x93   : > { %v302_v42 = vpop.permute.xlu1 %301  ;;  %v297_v43 = vpop.permute.xlu0 %296 }
  0x94   : > { %v1332_v44 = vmul.f32 %v308_v34, %v302_v42  ;;  %v1334_v45 = vmul.f32 %v312_v35, %v302_v42  ;;  %v1336_v46 = vmul.f32 %v308_v34, %v297_v43  ;;  %v1338_v47 = vmul.f32 %v312_v35, %v297_v43 }
  0x97   : > { %v683_v48 = vpop.permute.xlu1 %682  ;;  %v678_v49 = vpop.permute.xlu0 %677 }
  0x98   : > { %v728_v11 = vmul.f32 %v719_v53, %v683_v48  ;;  %v729_v12 = vmul.f32 %v723_v54, %v683_v48  ;;  %v726_v13 = vmul.f32 %v719_v53, %v678_v49  ;;  %v727_v14 = vmul.f32 %v723_v54, %v678_v49 }
  0x9b   : > { %v693_v51 = vpop.permute.xlu1 %692  ;;  %v688_v52 = vpop.permute.xlu0 %687 }
  0x9c   : > { %v732_v15 = vmul.f32 %v719_v53, %v693_v51  ;;  %v733_v16 = vmul.f32 %v723_v54, %v693_v51  ;;  %v1360_v17 = vmul.f32 %v719_v53, %v688_v52  ;;  %v1362_v18 = vmul.f32 %v723_v54, %v688_v52 }
  0x9f   : > { %v703_v55 = vpop.permute.xlu1 %702  ;;  %v698_v56 = vpop.permute.xlu0 %697 }
  0xa0   : > { %v1340_v57 = vmul.f32 %v719_v53, %v703_v55  ;;  %v1342_v58 = vmul.f32 %v723_v54, %v703_v55  ;;  %v1344_v59 = vmul.f32 %v719_v53, %v698_v56  ;;  %v1346_v60 = vmul.f32 %v723_v54, %v698_v56 }
  0xa3   : > { %v713_v1 = vpop.permute.xlu1 %712  ;;  %v708_v2 = vpop.permute.xlu0 %707 }
  0xa4   : > { %v1352_v3 = vmul.f32 %v719_v53, %v713_v1  ;;  %v1354_v4 = vmul.f32 %v723_v54, %v713_v1  ;;  %v1356_v5 = vmul.f32 %v719_v53, %v708_v2  ;;  %v1358_v6 = vmul.f32 %v723_v54, %v708_v2 }
  0xa7   : > { %v339_v19 = vpop.permute.xlu1 %338  ;;  %v334_v20 = vpop.permute.xlu0 %333 }
  0xa8   : > { %v373_v21 = vadd.f32 %v339_v19, %v317_v9  ;;  %v374_v22 = vadd.f32 %v339_v19, %v318_v10  ;;  %v744_v23 = vadd.f32 %v728_v11, %v339_v19  ;;  %v745_v24 = vadd.f32 %v729_v12, %v339_v19 }
  0xa9   : > { %v371_v25 = vadd.f32 %v334_v20, %v315_v63  ;;  %v372_v26 = vadd.f32 %v334_v20, %v316_v0  ;;  %v742_v27 = vadd.f32 %v726_v13, %v334_v20  ;;  %v743_v28 = vadd.f32 %v727_v14, %v334_v20 }
  0xaa   : > { %v389_v29 = vadd.f32 0.5, %v373_v21  ;;  %v390_v30 = vadd.f32 0.5, %v374_v22  ;;  %v760_v31 = vadd.f32 0.5, %v744_v23  ;;  %v761_v32 = vadd.f32 0.5, %v745_v24 }
  0xab   : > { %v387_v33 = vadd.f32 0.5, %v371_v25  ;;  %v388_v34 = vadd.f32 0.5, %v372_v26  ;;  %v758_v35 = vadd.f32 0.5, %v742_v27  ;;  %v759_v36 = vadd.f32 0.5, %v743_v28  ;;  %v349_v9 = vpop.permute.xlu1 %348 }
  0xac   : > { %v405_v37 = vfloor.f32 %v389_v29  ;;  %v406_v42 = vfloor.f32 %v390_v30  ;;  %v776_v43 = vfloor.f32 %v760_v31  ;;  %v777_v48 = vfloor.f32 %v761_v32 }
  0xad   : > { %v403_v49 = vfloor.f32 %v387_v33  ;;  %v404_v50 = vfloor.f32 %v388_v34  ;;  %v774_v51 = vfloor.f32 %v758_v35  ;;  %v775_v52 = vfloor.f32 %v759_v36 }
  0xae   : > { %v1364_v53 = vsub.f32 %v373_v21, %v405_v37  ;;  %v1366_v54 = vsub.f32 %v374_v22, %v406_v42  ;;  %v1368_v55 = vsub.f32 %v744_v23, %v776_v43  ;;  %v1370_v56 = vsub.f32 %v745_v24, %v777_v48 }
  0xaf   : > { %v1372_v63 = vsub.f32 %v371_v25, %v403_v49  ;;  %v1374_v0 = vsub.f32 %v372_v26, %v404_v50  ;;  %v1376_v1 = vsub.f32 %v742_v27, %v774_v51  ;;  %v1378_v2 = vsub.f32 %v743_v28, %v775_v52 }
  0xb0   : > { %v1382_v10 = vmul.f32 %v1364_v53, %v1364_v53  ;;  %v1386_v11 = vmul.f32 %v1366_v54, %v1366_v54  ;;  %v1390_v12 = vmul.f32 %v1368_v55, %v1368_v55  ;;  %v1394_v13 = vmul.f32 %v1370_v56, %v1370_v56 }
  0xb1   : > { %v1398_v14 = vmul.f32 %v1372_v63, %v1372_v63  ;;  %v1402_v19 = vmul.f32 %v1374_v0, %v1374_v0  ;;  %v1406_v20 = vmul.f32 %v1376_v1, %v1376_v1  ;;  %v1410_v21 = vmul.f32 %v1378_v2, %v1378_v2 }
  0xb2   : > { %v453_v22 = vmul.f32 3.8199525, %v1382_v10  ;;  %v454_v23 = vmul.f32 3.8199525, %v1386_v11  ;;  %v824_v24 = vmul.f32 3.8199525, %v1390_v12  ;;  %v1415_v25 = vadd.f32 %v349_v9, %v321_v7  ;;  %v1426_v7 = vpop.permute.xlu0 %343 }
  0xb3   : > { %v825_v26 = vmul.f32 3.8199525, %v1394_v13  ;;  %v451_v27 = vmul.f32 3.8199525, %v1398_v14  ;;  %v452_v28 = vmul.f32 3.8199525, %v1402_v19  ;;  %v1420_v29 = vadd.f32 %v349_v9, %v322_v8 }
  0xb4   : > { %v469_v30 = vadd.f32 -15.094643, %v453_v22  ;;  %v470_v31 = vadd.f32 -15.094643, %v454_v23  ;;  %v840_v32 = vadd.f32 -15.094643, %v824_v24  ;;  %v1422_v33 = vadd.f32 %v732_v15, %v349_v9 }
  0xb5   : > { %v841_v34 = vadd.f32 -15.094643, %v825_v26  ;;  %v467_v35 = vadd.f32 -15.094643, %v451_v27  ;;  %v468_v36 = vadd.f32 -15.094643, %v452_v28  ;;  %v1424_v37 = vadd.f32 %v733_v16, %v349_v9 }
  0xb6   : > { %v485_v42 = vmul.f32 %v469_v30, %v1382_v10  ;;  %v486_v43 = vmul.f32 %v470_v31, %v1386_v11  ;;  %v856_v48 = vmul.f32 %v840_v32, %v1390_v12  ;;  %v822_v8 = vmul.f32 3.8199525, %v1406_v20 }
  0xb7   : > { %v857_v49 = vmul.f32 %v841_v34, %v1394_v13  ;;  %v483_v15 = vmul.f32 %v467_v35, %v1398_v14  ;;  %v484_v50 = vmul.f32 %v468_v36, %v1402_v19  ;;  %v823_v51 = vmul.f32 3.8199525, %v1410_v21 }
  0xb8   : > { %v501_v16 = vadd.f32 42.058693, %v485_v42  ;;  %v502_v52 = vadd.f32 42.058693, %v486_v43  ;;  %v872_v9 = vadd.f32 42.058693, %v856_v48  ;;  %v1438_v22 = vadd.f32 %v1426_v7, %v1348_v61 }
  0xb9   : > { %v873_v23 = vadd.f32 42.058693, %v857_v49  ;;  %v499_v24 = vadd.f32 42.058693, %v483_v15  ;;  %v500_v26 = vadd.f32 42.058693, %v484_v50  ;;  %v1442_v27 = vadd.f32 %v1426_v7, %v1350_v62 }
  0xba   : > { %v517_v28 = vmul.f32 %v501_v16, %v1382_v10  ;;  %v518_v30 = vmul.f32 %v502_v52, %v1386_v11  ;;  %v888_v31 = vmul.f32 %v872_v9, %v1390_v12  ;;  %v838_v32 = vadd.f32 -15.094643, %v822_v8 }
  0xbb   : > { %v889_v34 = vmul.f32 %v873_v23, %v1394_v13  ;;  %v515_v35 = vmul.f32 %v499_v24, %v1398_v14  ;;  %v516_v61 = vmul.f32 %v500_v26, %v1402_v19  ;;  %v839_v36 = vadd.f32 -15.094643, %v823_v51 }
  0xbc   : > { %v533_v42 = vadd.f32 -76.70586, %v517_v28  ;;  %v534_v43 = vadd.f32 -76.70586, %v518_v30  ;;  %v904_v48 = vadd.f32 -76.70586, %v888_v31  ;;  %v854_v62 = vmul.f32 %v838_v32, %v1406_v20 }
  0xbd   : > { %v905_v49 = vadd.f32 -76.70586, %v889_v34  ;;  %v531_v15 = vadd.f32 -76.70586, %v515_v35  ;;  %v532_v50 = vadd.f32 -76.70586, %v516_v61  ;;  %v855_v16 = vmul.f32 %v839_v36, %v1410_v21 }
  0xbe   : > { %v549_v52 = vmul.f32 %v533_v42, %v1382_v10  ;;  %v550_v8 = vmul.f32 %v534_v43, %v1386_v11  ;;  %v920_v9 = vmul.f32 %v904_v48, %v1390_v12  ;;  %v870_v23 = vadd.f32 42.058693, %v854_v62 }
  0xbf   : > { %v921_v24 = vmul.f32 %v905_v49, %v1394_v13  ;;  %v547_v51 = vmul.f32 %v531_v15, %v1398_v14  ;;  %v548_v26 = vmul.f32 %v532_v50, %v1402_v19  ;;  %v871_v28 = vadd.f32 42.058693, %v855_v16 }
  0xc0   : > { %v565_v30 = vadd.f32 81.60525, %v549_v52  ;;  %v566_v31 = vadd.f32 81.60525, %v550_v8  ;;  %v936_v32 = vadd.f32 81.60525, %v920_v9  ;;  %v886_v34 = vmul.f32 %v870_v23, %v1406_v20 }
  0xc1   : > { %v937_v35 = vadd.f32 81.60525, %v921_v24  ;;  %v563_v61 = vadd.f32 81.60525, %v547_v51  ;;  %v564_v36 = vadd.f32 81.60525, %v548_v26  ;;  %v887_v42 = vmul.f32 %v871_v28, %v1410_v21 }
  0xc2   : > { %v581_v43 = vmul.f32 %v565_v30, %v1382_v10  ;;  %v582_v48 = vmul.f32 %v566_v31, %v1386_v11  ;;  %v952_v62 = vmul.f32 %v936_v32, %v1390_v12  ;;  %v902_v49 = vadd.f32 -76.70586, %v886_v34 }
  0xc3   : > { %v953_v15 = vmul.f32 %v937_v35, %v1394_v13  ;;  %v579_v50 = vmul.f32 %v563_v61, %v1398_v14  ;;  %v580_v16 = vmul.f32 %v564_v36, %v1402_v19  ;;  %v903_v52 = vadd.f32 -76.70586, %v887_v42 }
  0xc4   : > { %v597_v8 = vadd.f32 -41.3417, %v581_v43  ;;  %v598_v9 = vadd.f32 -41.3417, %v582_v48  ;;  %v968_v23 = vadd.f32 -41.3417, %v952_v62  ;;  %v918_v24 = vmul.f32 %v902_v49, %v1406_v20 }
  0xc5   : > { %v969_v51 = vadd.f32 -41.3417, %v953_v15  ;;  %v595_v26 = vadd.f32 -41.3417, %v579_v50  ;;  %v596_v28 = vadd.f32 -41.3417, %v580_v16  ;;  %v919_v30 = vmul.f32 %v903_v52, %v1410_v21 }
  0xc6   : > { %v613_v31 = vmul.f32 %v597_v8, %v1382_v10  ;;  %v614_v32 = vmul.f32 %v598_v9, %v1386_v11  ;;  %v984_v34 = vmul.f32 %v968_v23, %v1390_v12  ;;  %v934_v35 = vadd.f32 81.60525, %v918_v24 }
  0xc7   : > { %v985_v61 = vmul.f32 %v969_v51, %v1394_v13  ;;  %v611_v36 = vmul.f32 %v595_v26, %v1398_v14  ;;  %v612_v42 = vmul.f32 %v596_v28, %v1402_v19  ;;  %v935_v43 = vadd.f32 81.60525, %v919_v30 }
  0xc8   : > { %v629_v48 = vadd.f32 6.2831855, %v613_v31  ;;  %v630_v62 = vadd.f32 6.2831855, %v614_v32  ;;  %v1000_v49 = vadd.f32 6.2831855, %v984_v34  ;;  %v950_v15 = vmul.f32 %v934_v35, %v1406_v20 }
  0xc9   : > { %v1001_v10 = vadd.f32 6.2831855, %v985_v61  ;;  %v627_v11 = vadd.f32 6.2831855, %v611_v36  ;;  %v628_v12 = vadd.f32 6.2831855, %v612_v42  ;;  %v951_v13 = vmul.f32 %v935_v43, %v1410_v21 }
  0xca   : > { %v645_v14 = vmul.f32 %v629_v48, %v1364_v53  ;;  %v646_v19 = vmul.f32 %v630_v62, %v1366_v54  ;;  %v1016_v50 = vmul.f32 %v1000_v49, %v1368_v55  ;;  %v966_v16 = vadd.f32 -41.3417, %v950_v15 }
  0xcb   : > { %v1017_v52 = vmul.f32 %v1001_v10, %v1370_v56  ;;  %v643_v8 = vmul.f32 %v627_v11, %v1372_v63  ;;  %v644_v9 = vmul.f32 %v628_v12, %v1374_v0  ;;  %v967_v23 = vadd.f32 -41.3417, %v951_v13 }
  0xcc   : > { %661 = vst [vmem:[%s1479_s29 + $0x10] sm:$0xff] %v645_v14  ;;  %662 = vst [vmem:[%s1479_s29 + $0x18] sm:$0xff] %v646_v19  ;;  %v982_v24 = vmul.f32 %v966_v16, %v1406_v20  ;;  %v393_v53 = vadd.f32 0.5, %v1415_v25  ;;  %v394_v54 = vadd.f32 0.5, %v1420_v29  ;;  %v764_v51 = vadd.f32 0.5, %v1422_v33 }
  0xcd   : > { %1032 = vst [vmem:[%s1479_s29 + $0x90] sm:$0xff] %v1016_v50  ;;  %1033 = vst [vmem:[%s1479_s29 + $0x98] sm:$0xff] %v1017_v52  ;;  %v983_v55 = vmul.f32 %v967_v23, %v1410_v21  ;;  %v765_v56 = vadd.f32 0.5, %v1424_v37  ;;  %v391_v63 = vadd.f32 0.5, %v1438_v22  ;;  %v392_v0 = vadd.f32 0.5, %v1442_v27 }
  0xce   : > { %659 = vst [vmem:[%s1479_s29] sm:$0xff] %v643_v8  ;;  %660 = vst [vmem:[%s1479_s29 + $0x8] sm:$0xff] %v644_v9  ;;  %v998_v26 = vadd.f32 6.2831855, %v982_v24  ;;  %v409_v28 = vfloor.f32 %v393_v53  ;;  %v410_v20 = vfloor.f32 %v394_v54  ;;  %v780_v30 = vfloor.f32 %v764_v51 }
  0xcf   : > { %v999_v31 = vadd.f32 6.2831855, %v983_v55  ;;  %v781_v32 = vfloor.f32 %v765_v56  ;;  %v407_v34 = vfloor.f32 %v391_v63  ;;  %v408_v35 = vfloor.f32 %v392_v0 }
  0xd0   : > { %v1014_v61 = vmul.f32 %v998_v26, %v1376_v1  ;;  %v1504_v21 = vsub.f32 %v1415_v25, %v409_v28  ;;  %v1507_v36 = vsub.f32 %v1420_v29, %v410_v20  ;;  %v1510_v42 = vsub.f32 %v1422_v33, %v780_v30  ;;  %v359_v1 = vpop.permute.xlu1 %358 }
  0xd1   : > { %v1015_v43 = vmul.f32 %v999_v31, %v1378_v2  ;;  %v1514_v48 = vsub.f32 %v1424_v37, %v781_v32  ;;  %v1517_v62 = vsub.f32 %v1438_v22, %v407_v34  ;;  %v1520_v49 = vsub.f32 %v1442_v27, %v408_v35 }
  0xd2   : > { %1030 = vst [vmem:[%s1479_s29 + $0x80] sm:$0xff] %v1014_v61  ;;  %v1525_v25 = vmul.f32 %v1504_v21, %v1504_v21  ;;  %v1529_v29 = vmul.f32 %v1507_v36, %v1507_v36  ;;  %v1533_v2 = vmul.f32 %v1510_v42, %v1510_v42  ;;  %v746_v33 = vadd.f32 %v1360_v17, %v1426_v7 }
  0xd3   : > { %1031 = vst [vmem:[%s1479_s29 + $0x88] sm:$0xff] %v1015_v43  ;;  %v1540_v37 = vmul.f32 %v1514_v48, %v1514_v48  ;;  %v1544_v22 = vmul.f32 %v1517_v62, %v1517_v62  ;;  %v1548_v27 = vmul.f32 %v1520_v49, %v1520_v49  ;;  %v747_v15 = vadd.f32 %v1362_v18, %v1426_v7 }
  0xd4   : > { %v457_v10 = vmul.f32 3.8199525, %v1525_v25  ;;  %v458_v17 = vmul.f32 3.8199525, %v1529_v29  ;;  %v828_v11 = vmul.f32 3.8199525, %v1533_v2  ;;  %v1556_v12 = vadd.f32 %v359_v1, %v1324_v38 }
  0xd5   : > { %v829_v13 = vmul.f32 3.8199525, %v1540_v37  ;;  %v455_v14 = vmul.f32 3.8199525, %v1544_v22  ;;  %v456_v19 = vmul.f32 3.8199525, %v1548_v27  ;;  %v1562_v50 = vadd.f32 %v359_v1, %v1326_v39 }
  0xd6   : > { %v473_v16 = vadd.f32 -15.094643, %v457_v10  ;;  %v474_v18 = vadd.f32 -15.094643, %v458_v17  ;;  %v844_v7 = vadd.f32 -15.094643, %v828_v11  ;;  %v1565_v52 = vadd.f32 %v1340_v57, %v359_v1 }
  0xd7   : > { %v845_v8 = vadd.f32 -15.094643, %v829_v13  ;;  %v471_v9 = vadd.f32 -15.094643, %v455_v14  ;;  %v472_v23 = vadd.f32 -15.094643, %v456_v19  ;;  %v1568_v38 = vadd.f32 %v1342_v58, %v359_v1 }
  0xd8   : > { %v489_v24 = vmul.f32 %v473_v16, %v1525_v25  ;;  %v490_v53 = vmul.f32 %v474_v18, %v1529_v29  ;;  %v860_v54 = vmul.f32 %v844_v7, %v1533_v2  ;;  %v762_v39 = vadd.f32 0.5, %v746_v33 }
  0xd9   : > { %v861_v51 = vmul.f32 %v845_v8, %v1540_v37  ;;  %v487_v55 = vmul.f32 %v471_v9, %v1544_v22  ;;  %v488_v57 = vmul.f32 %v472_v23, %v1548_v27  ;;  %v763_v56 = vadd.f32 0.5, %v747_v15  ;;  %v1594_v8 = vpop.permute.xlu0 %353 }
  0xda   : > { %v505_v63 = vadd.f32 42.058693, %v489_v24  ;;  %v506_v0 = vadd.f32 42.058693, %v490_v53  ;;  %v876_v26 = vadd.f32 42.058693, %v860_v54  ;;  %v778_v28 = vfloor.f32 %v762_v39 }
  0xdb   : > { %v877_v58 = vadd.f32 42.058693, %v861_v51  ;;  %v503_v20 = vadd.f32 42.058693, %v487_v55  ;;  %v504_v30 = vadd.f32 42.058693, %v488_v57  ;;  %v779_v31 = vfloor.f32 %v763_v56 }
  0xdc   : > { %v521_v32 = vmul.f32 %v505_v63, %v1525_v25  ;;  %v522_v34 = vmul.f32 %v506_v0, %v1529_v29  ;;  %v892_v35 = vmul.f32 %v876_v26, %v1533_v2  ;;  %v1579_v61 = vsub.f32 %v746_v33, %v778_v28 }
  0xdd   : > { %v893_v43 = vmul.f32 %v877_v58, %v1540_v37  ;;  %v519_v1 = vmul.f32 %v503_v20, %v1544_v22  ;;  %v520_v10 = vmul.f32 %v504_v30, %v1548_v27  ;;  %v1584_v17 = vsub.f32 %v747_v15, %v779_v31 }
  0xde   : > { %v537_v11 = vadd.f32 -76.70586, %v521_v32  ;;  %v538_v13 = vadd.f32 -76.70586, %v522_v34  ;;  %v908_v14 = vadd.f32 -76.70586, %v892_v35  ;;  %v1588_v19 = vmul.f32 %v1579_v61, %v1579_v61 }
  0xdf   : > { %v909_v16 = vadd.f32 -76.70586, %v893_v43  ;;  %v535_v18 = vadd.f32 -76.70586, %v519_v1  ;;  %v536_v7 = vadd.f32 -76.70586, %v520_v10  ;;  %v1592_v33 = vmul.f32 %v1584_v17, %v1584_v17 }
  0xe0   : > { %v553_v9 = vmul.f32 %v537_v11, %v1525_v25  ;;  %v554_v15 = vmul.f32 %v538_v13, %v1529_v29  ;;  %v924_v23 = vmul.f32 %v908_v14, %v1533_v2  ;;  %v826_v24 = vmul.f32 3.8199525, %v1588_v19 }
  0xe1   : > { %v925_v53 = vmul.f32 %v909_v16, %v1540_v37  ;;  %v551_v54 = vmul.f32 %v535_v18, %v1544_v22  ;;  %v552_v39 = vmul.f32 %v536_v7, %v1548_v27  ;;  %v827_v51 = vmul.f32 3.8199525, %v1592_v33 }
  0xe2   : > { %v569_v55 = vadd.f32 81.60525, %v553_v9  ;;  %v570_v57 = vadd.f32 81.60525, %v554_v15  ;;  %v940_v56 = vadd.f32 81.60525, %v924_v23  ;;  %v1606_v63 = vadd.f32 %v1594_v8, %v1328_v40 }
  0xe3   : > { %v941_v0 = vadd.f32 81.60525, %v925_v53  ;;  %v567_v26 = vadd.f32 81.60525, %v551_v54  ;;  %v568_v28 = vadd.f32 81.60525, %v552_v39  ;;  %v1610_v58 = vadd.f32 %v1594_v8, %v1330_v41 }
  0xe4   : > { %v585_v20 = vmul.f32 %v569_v55, %v1525_v25  ;;  %v586_v30 = vmul.f32 %v570_v57, %v1529_v29  ;;  %v956_v31 = vmul.f32 %v940_v56, %v1533_v2  ;;  %v842_v32 = vadd.f32 -15.094643, %v826_v24 }
  0xe5   : > { %v957_v34 = vmul.f32 %v941_v0, %v1540_v37  ;;  %v583_v35 = vmul.f32 %v567_v26, %v1544_v22  ;;  %v584_v40 = vmul.f32 %v568_v28, %v1548_v27  ;;  %v843_v43 = vadd.f32 -15.094643, %v827_v51 }
  0xe6   : > { %v601_v1 = vadd.f32 -41.3417, %v585_v20  ;;  %v602_v10 = vadd.f32 -41.3417, %v586_v30  ;;  %v972_v11 = vadd.f32 -41.3417, %v956_v31  ;;  %v858_v41 = vmul.f32 %v842_v32, %v1588_v19 }
  0xe7   : > { %v973_v13 = vadd.f32 -41.3417, %v957_v34  ;;  %v599_v14 = vadd.f32 -41.3417, %v583_v35  ;;  %v600_v16 = vadd.f32 -41.3417, %v584_v40  ;;  %v859_v18 = vmul.f32 %v843_v43, %v1592_v33 }
  0xe8   : > { %v617_v7 = vmul.f32 %v601_v1, %v1525_v25  ;;  %v618_v9 = vmul.f32 %v602_v10, %v1529_v29  ;;  %v988_v15 = vmul.f32 %v972_v11, %v1533_v2  ;;  %v874_v23 = vadd.f32 42.058693, %v858_v41 }
  0xe9   : > { %v989_v24 = vmul.f32 %v973_v13, %v1540_v37  ;;  %v615_v53 = vmul.f32 %v599_v14, %v1544_v22  ;;  %v616_v54 = vmul.f32 %v600_v16, %v1548_v27  ;;  %v875_v39 = vadd.f32 42.058693, %v859_v18 }
  0xea   : > { %v633_v51 = vadd.f32 6.2831855, %v617_v7  ;;  %v634_v55 = vadd.f32 6.2831855, %v618_v9  ;;  %v1004_v57 = vadd.f32 6.2831855, %v988_v15  ;;  %v890_v25 = vmul.f32 %v874_v23, %v1588_v19 }
  0xeb   : > { %v1005_v56 = vadd.f32 6.2831855, %v989_v24  ;;  %v631_v29 = vadd.f32 6.2831855, %v615_v53  ;;  %v632_v0 = vadd.f32 6.2831855, %v616_v54  ;;  %v891_v2 = vmul.f32 %v875_v39, %v1592_v33 }
  0xec   : > { %v649_v37 = vmul.f32 %v633_v51, %v1504_v21  ;;  %v650_v22 = vmul.f32 %v634_v55, %v1507_v36  ;;  %v1020_v27 = vmul.f32 %v1004_v57, %v1510_v42  ;;  %v906_v26 = vadd.f32 -76.70586, %v890_v25 }
  0xed   : > { %v1021_v28 = vmul.f32 %v1005_v56, %v1514_v48  ;;  %v647_v20 = vmul.f32 %v631_v29, %v1517_v62  ;;  %v648_v30 = vmul.f32 %v632_v0, %v1520_v49  ;;  %v907_v31 = vadd.f32 -76.70586, %v891_v2 }
  0xee   : > { %665 = vst [vmem:[%s1479_s29 + $0x30] sm:$0xff] %v649_v37  ;;  %666 = vst [vmem:[%s1479_s29 + $0x38] sm:$0xff] %v650_v22  ;;  %v922_v32 = vmul.f32 %v906_v26, %v1588_v19  ;;  %v397_v21 = vadd.f32 0.5, %v1556_v12  ;;  %v398_v36 = vadd.f32 0.5, %v1562_v50  ;;  %v768_v34 = vadd.f32 0.5, %v1565_v52 }
  0xef   : > { %1036 = vst [vmem:[%s1479_s29 + $0xb0] sm:$0xff] %v1020_v27  ;;  %1037 = vst [vmem:[%s1479_s29 + $0xb8] sm:$0xff] %v1021_v28  ;;  %v923_v42 = vmul.f32 %v907_v31, %v1592_v33  ;;  %v769_v48 = vadd.f32 0.5, %v1568_v38  ;;  %v395_v62 = vadd.f32 0.5, %v1606_v63  ;;  %v396_v49 = vadd.f32 0.5, %v1610_v58 }
  0xf0   : > { %663 = vst [vmem:[%s1479_s29 + $0x20] sm:$0xff] %v647_v20  ;;  %664 = vst [vmem:[%s1479_s29 + $0x28] sm:$0xff] %v648_v30  ;;  %v938_v35 = vadd.f32 81.60525, %v922_v32  ;;  %v413_v40 = vfloor.f32 %v397_v21  ;;  %v414_v43 = vfloor.f32 %v398_v36  ;;  %v784_v1 = vfloor.f32 %v768_v34 }
  0xf1   : > { %v939_v10 = vadd.f32 81.60525, %v923_v42  ;;  %v785_v11 = vfloor.f32 %v769_v48  ;;  %v411_v41 = vfloor.f32 %v395_v62  ;;  %v412_v13 = vfloor.f32 %v396_v49 }
  0xf2   : > { %v954_v14 = vmul.f32 %v938_v35, %v1588_v19  ;;  %v1650_v16 = vsub.f32 %v1556_v12, %v413_v40  ;;  %v1653_v18 = vsub.f32 %v1562_v50, %v414_v43  ;;  %v1656_v7 = vsub.f32 %v1565_v52, %v784_v1 }
  0xf3   : > { %v955_v9 = vmul.f32 %v939_v10, %v1592_v33  ;;  %v1660_v15 = vsub.f32 %v1568_v38, %v785_v11  ;;  %v1663_v23 = vsub.f32 %v1606_v63, %v411_v41  ;;  %v1666_v24 = vsub.f32 %v1610_v58, %v412_v13 }
  0xf4   : > { %v970_v53 = vadd.f32 -41.3417, %v954_v14  ;;  %v1670_v12 = vmul.f32 %v1650_v16, %v1650_v16  ;;  %v1674_v50 = vmul.f32 %v1653_v18, %v1653_v18  ;;  %v1678_v52 = vmul.f32 %v1656_v7, %v1656_v7 }
  0xf5   : > { %v971_v38 = vadd.f32 -41.3417, %v955_v9  ;;  %v1682_v63 = vmul.f32 %v1660_v15, %v1660_v15  ;;  %v1686_v58 = vmul.f32 %v1663_v23, %v1663_v23  ;;  %v1690_v54 = vmul.f32 %v1666_v24, %v1666_v24 }
  0xf6   : > { %v986_v39 = vmul.f32 %v970_v53, %v1588_v19  ;;  %v461_v51 = vmul.f32 3.8199525, %v1670_v12  ;;  %v462_v55 = vmul.f32 3.8199525, %v1674_v50  ;;  %v832_v57 = vmul.f32 3.8199525, %v1678_v52 }
  0xf7   : > { %v987_v25 = vmul.f32 %v971_v38, %v1592_v33  ;;  %v833_v56 = vmul.f32 3.8199525, %v1682_v63  ;;  %v459_v29 = vmul.f32 3.8199525, %v1686_v58  ;;  %v460_v0 = vmul.f32 3.8199525, %v1690_v54 }
  0xf8   : > { %v1002_v2 = vadd.f32 6.2831855, %v986_v39  ;;  %v477_v37 = vadd.f32 -15.094643, %v461_v51  ;;  %v478_v22 = vadd.f32 -15.094643, %v462_v55  ;;  %v750_v19 = vadd.f32 %v1344_v59, %v1594_v8 }
  0xf9   : > { %v1003_v27 = vadd.f32 6.2831855, %v987_v25  ;;  %v848_v26 = vadd.f32 -15.094643, %v832_v57  ;;  %v849_v28 = vadd.f32 -15.094643, %v833_v56  ;;  %v751_v33 = vadd.f32 %v1346_v60, %v1594_v8 }
  0xfa   : > { %v1018_v20 = vmul.f32 %v1002_v2, %v1579_v61  ;;  %v493_v30 = vmul.f32 %v477_v37, %v1670_v12  ;;  %v494_v31 = vmul.f32 %v478_v22, %v1674_v50  ;;  %v475_v32 = vadd.f32 -15.094643, %v459_v29 }
  0xfb   : > { %v1019_v21 = vmul.f32 %v1003_v27, %v1584_v17  ;;  %v864_v36 = vmul.f32 %v848_v26, %v1678_v52  ;;  %v865_v59 = vmul.f32 %v849_v28, %v1682_v63  ;;  %v476_v34 = vadd.f32 -15.094643, %v460_v0 }
  0xfc   : > { %1034 = vst [vmem:[%s1479_s29 + $0xa0] sm:$0xff] %v1018_v20  ;;  %v509_v42 = vadd.f32 42.058693, %v493_v30  ;;  %v510_v48 = vadd.f32 42.058693, %v494_v31  ;;  %v491_v62 = vmul.f32 %v475_v32, %v1686_v58  ;;  %v766_v60 = vadd.f32 0.5, %v750_v19 }
  0xfd   : > { %1035 = vst [vmem:[%s1479_s29 + $0xa8] sm:$0xff] %v1019_v21  ;;  %v880_v61 = vadd.f32 42.058693, %v864_v36  ;;  %v881_v8 = vadd.f32 42.058693, %v865_v59  ;;  %v492_v49 = vmul.f32 %v476_v34, %v1690_v54  ;;  %v767_v35 = vadd.f32 0.5, %v751_v33 }
  0xfe   : > { %v525_v40 = vmul.f32 %v509_v42, %v1670_v12  ;;  %v526_v17 = vmul.f32 %v510_v48, %v1674_v50  ;;  %v507_v43 = vadd.f32 42.058693, %v491_v62  ;;  %v782_v1 = vfloor.f32 %v766_v60 }
  0xff   : > { %v896_v10 = vmul.f32 %v880_v61, %v1678_v52  ;;  %v897_v11 = vmul.f32 %v881_v8, %v1682_v63  ;;  %v508_v41 = vadd.f32 42.058693, %v492_v49  ;;  %v783_v13 = vfloor.f32 %v767_v35 }
 0x100   : > { %v541_v14 = vadd.f32 -76.70586, %v525_v40  ;;  %v542_v9 = vadd.f32 -76.70586, %v526_v17  ;;  %v523_v53 = vmul.f32 %v507_v43, %v1686_v58  ;;  %v1719_v38 = vsub.f32 %v750_v19, %v782_v1 }
 0x101   : > { %v912_v39 = vadd.f32 -76.70586, %v896_v10  ;;  %v913_v51 = vadd.f32 -76.70586, %v897_v11  ;;  %v524_v55 = vmul.f32 %v508_v41, %v1690_v54  ;;  %v1722_v57 = vsub.f32 %v751_v33, %v783_v13 }
 0x102   : > { %v557_v25 = vmul.f32 %v541_v14, %v1670_v12  ;;  %v558_v56 = vmul.f32 %v542_v9, %v1674_v50  ;;  %v539_v29 = vadd.f32 -76.70586, %v523_v53  ;;  %v1728_v0 = vmul.f32 %v1719_v38, %v1719_v38 }
 0x103   : > { %v928_v2 = vmul.f32 %v912_v39, %v1678_v52  ;;  %v929_v37 = vmul.f32 %v913_v51, %v1682_v63  ;;  %v540_v22 = vadd.f32 -76.70586, %v524_v55  ;;  %v1734_v19 = vmul.f32 %v1722_v57, %v1722_v57 }
 0x104   : > { %v573_v27 = vadd.f32 81.60525, %v557_v25  ;;  %v574_v26 = vadd.f32 81.60525, %v558_v56  ;;  %v555_v28 = vmul.f32 %v539_v29, %v1686_v58  ;;  %v830_v33 = vmul.f32 3.8199525, %v1728_v0 }
 0x105   : > { %v944_v20 = vadd.f32 81.60525, %v928_v2  ;;  %v945_v30 = vadd.f32 81.60525, %v929_v37  ;;  %v556_v31 = vmul.f32 %v540_v22, %v1690_v54  ;;  %v831_v32 = vmul.f32 3.8199525, %v1734_v19  ;;  %v369_v37 = vpop.permute.xlu1 %368 }
 0x106   : > { %v589_v21 = vmul.f32 %v573_v27, %v1670_v12  ;;  %v590_v36 = vmul.f32 %v574_v26, %v1674_v50  ;;  %v571_v59 = vadd.f32 81.60525, %v555_v28  ;;  %v846_v34 = vadd.f32 -15.094643, %v830_v33 }
 0x107   : > { %v960_v42 = vmul.f32 %v944_v20, %v1678_v52  ;;  %v961_v48 = vmul.f32 %v945_v30, %v1682_v63  ;;  %v572_v62 = vadd.f32 81.60525, %v556_v31  ;;  %v847_v60 = vadd.f32 -15.094643, %v831_v32  ;;  %v1760_v20 = vpop.permute.xlu0 %363 }
 0x108   : > { %v605_v61 = vadd.f32 -41.3417, %v589_v21  ;;  %v606_v8 = vadd.f32 -41.3417, %v590_v36  ;;  %v587_v49 = vmul.f32 %v571_v59, %v1686_v58  ;;  %v862_v35 = vmul.f32 %v846_v34, %v1728_v0 }
 0x109   : > { %v976_v40 = vadd.f32 -41.3417, %v960_v42  ;;  %v977_v17 = vadd.f32 -41.3417, %v961_v48  ;;  %v588_v43 = vmul.f32 %v572_v62, %v1690_v54  ;;  %v863_v1 = vmul.f32 %v847_v60, %v1734_v19 }
 0x10a   : > { %v621_v10 = vmul.f32 %v605_v61, %v1670_v12  ;;  %v622_v11 = vmul.f32 %v606_v8, %v1674_v50  ;;  %v603_v41 = vadd.f32 -41.3417, %v587_v49  ;;  %v878_v13 = vadd.f32 42.058693, %v862_v35 }
 0x10b   : > { %v992_v14 = vmul.f32 %v976_v40, %v1678_v52  ;;  %v993_v9 = vmul.f32 %v977_v17, %v1682_v63  ;;  %v604_v53 = vadd.f32 -41.3417, %v588_v43  ;;  %v879_v39 = vadd.f32 42.058693, %v863_v1 }
 0x10c   : > { %v637_v51 = vadd.f32 6.2831855, %v621_v10  ;;  %v638_v55 = vadd.f32 6.2831855, %v622_v11  ;;  %v619_v25 = vmul.f32 %v603_v41, %v1686_v58  ;;  %v894_v56 = vmul.f32 %v878_v13, %v1728_v0 }
 0x10d   : > { %v1008_v29 = vadd.f32 6.2831855, %v992_v14  ;;  %v1009_v12 = vadd.f32 6.2831855, %v993_v9  ;;  %v620_v50 = vmul.f32 %v604_v53, %v1690_v54  ;;  %v895_v2 = vmul.f32 %v879_v39, %v1734_v19 }
 0x10e   : > { %v653_v52 = vmul.f32 %v637_v51, %v1650_v16  ;;  %v654_v63 = vmul.f32 %v638_v55, %v1653_v18  ;;  %v635_v22 = vadd.f32 6.2831855, %v619_v25  ;;  %v910_v27 = vadd.f32 -76.70586, %v894_v56 }
 0x10f   : > { %v1024_v58 = vmul.f32 %v1008_v29, %v1656_v7  ;;  %v1025_v26 = vmul.f32 %v1009_v12, %v1660_v15  ;;  %v636_v28 = vadd.f32 6.2831855, %v620_v50  ;;  %v911_v33 = vadd.f32 -76.70586, %v895_v2 }
 0x110   : > { %669 = vst [vmem:[%s1479_s29 + $0x50] sm:$0xff] %v653_v52  ;;  %670 = vst [vmem:[%s1479_s29 + $0x58] sm:$0xff] %v654_v63  ;;  %v651_v54 = vmul.f32 %v635_v22, %v1663_v23  ;;  %v926_v16 = vmul.f32 %v910_v27, %v1728_v0  ;;  %v385_v18 = vadd.f32 %v369_v37, %v1332_v44 }
 0x111   : > { %v386_v30 = vadd.f32 %v369_v37, %v1334_v45  ;;  %1040 = vst [vmem:[%s1479_s29 + $0xd0] sm:$0xff] %v1024_v58  ;;  %1041 = vst [vmem:[%s1479_s29 + $0xd8] sm:$0xff] %v1025_v26  ;;  %v652_v7 = vmul.f32 %v636_v28, %v1666_v24  ;;  %v927_v15 = vmul.f32 %v911_v33, %v1734_v19 }
 0x112   : > { %v756_v31 = vadd.f32 %v1352_v3, %v369_v37  ;;  %v757_v32 = vadd.f32 %v1354_v4, %v369_v37  ;;  %667 = vst [vmem:[%s1479_s29 + $0x40] sm:$0xff] %v651_v54  ;;  %v942_v21 = vadd.f32 81.60525, %v926_v16  ;;  %v401_v36 = vadd.f32 0.5, %v385_v18 }
 0x113   : > { %v402_v23 = vadd.f32 0.5, %v386_v30  ;;  %v383_v59 = vadd.f32 %v1760_v20, %v1336_v46  ;;  %668 = vst [vmem:[%s1479_s29 + $0x48] sm:$0xff] %v652_v7  ;;  %v943_v44 = vadd.f32 81.60525, %v927_v15  ;;  %v384_v24 = vadd.f32 %v1760_v20, %v1338_v47 }
 0x114   : > { %v772_v45 = vadd.f32 0.5, %v756_v31  ;;  %v773_v34 = vadd.f32 0.5, %v757_v32  ;;  %v958_v42 = vmul.f32 %v942_v21, %v1728_v0  ;;  %v417_v48 = vfloor.f32 %v401_v36 }
 0x115   : > { %v418_v3 = vfloor.f32 %v402_v23  ;;  %v399_v62 = vadd.f32 0.5, %v383_v59  ;;  %v959_v4 = vmul.f32 %v943_v44, %v1734_v19  ;;  %v400_v8 = vadd.f32 0.5, %v384_v24 }
 0x116   : > { %v788_v60 = vfloor.f32 %v772_v45  ;;  %v789_v61 = vfloor.f32 %v773_v34  ;;  %v974_v49 = vadd.f32 -41.3417, %v958_v42  ;;  %v1782_v35 = vsub.f32 %v385_v18, %v417_v48 }
 0x117   : > { %v1784_v46 = vsub.f32 %v386_v30, %v418_v3  ;;  %v415_v40 = vfloor.f32 %v399_v62  ;;  %v975_v17 = vadd.f32 -41.3417, %v959_v4  ;;  %v416_v1 = vfloor.f32 %v400_v8 }
 0x118   : > { %v1786_v43 = vsub.f32 %v756_v31, %v788_v60  ;;  %v1788_v47 = vsub.f32 %v757_v32, %v789_v61  ;;  %v990_v10 = vmul.f32 %v974_v49, %v1728_v0  ;;  %v1793_v11 = vmul.f32 %v1782_v35, %v1782_v35 }
 0x119   : > { %v1797_v41 = vmul.f32 %v1784_v46, %v1784_v46  ;;  %v1799_v13 = vsub.f32 %v383_v59, %v415_v40  ;;  %v991_v14 = vmul.f32 %v975_v17, %v1734_v19  ;;  %v1810_v0 = vsub.f32 %v384_v24, %v416_v1 }
 0x11a   : > { %v1804_v9 = vmul.f32 %v1786_v43, %v1786_v43  ;;  %v1808_v53 = vmul.f32 %v1788_v47, %v1788_v47  ;;  %v1006_v39 = vadd.f32 6.2831855, %v990_v10  ;;  %v465_v51 = vmul.f32 3.8199525, %v1793_v11 }
 0x11b   : > { %v466_v55 = vmul.f32 3.8199525, %v1797_v41  ;;  %v1816_v25 = vmul.f32 %v1799_v13, %v1799_v13  ;;  %v1007_v19 = vadd.f32 6.2831855, %v991_v14  ;;  %v1822_v12 = vmul.f32 %v1810_v0, %v1810_v0 }
 0x11c   : > { %v836_v56 = vmul.f32 3.8199525, %v1804_v9  ;;  %v837_v29 = vmul.f32 3.8199525, %v1808_v53  ;;  %v1022_v50 = vmul.f32 %v1006_v39, %v1719_v38  ;;  %v481_v2 = vadd.f32 -15.094643, %v465_v51 }
 0x11d   : > { %v482_v37 = vadd.f32 -15.094643, %v466_v55  ;;  %v463_v52 = vmul.f32 3.8199525, %v1816_v25  ;;  %v1023_v63 = vmul.f32 %v1007_v19, %v1722_v57  ;;  %v464_v58 = vmul.f32 3.8199525, %v1822_v12 }
 0x11e   : > { %v852_v22 = vadd.f32 -15.094643, %v836_v56  ;;  %v853_v27 = vadd.f32 -15.094643, %v837_v29  ;;  %1038 = vst [vmem:[%s1479_s29 + $0xc0] sm:$0xff] %v1022_v50  ;;  %v497_v26 = vmul.f32 %v481_v2, %v1793_v11  ;;  %v754_v54 = vadd.f32 %v1356_v5, %v1760_v20 }
 0x11f   : > { %v498_v28 = vmul.f32 %v482_v37, %v1797_v41  ;;  %v479_v33 = vadd.f32 -15.094643, %v463_v52  ;;  %1039 = vst [vmem:[%s1479_s29 + $0xc8] sm:$0xff] %v1023_v63  ;;  %v480_v18 = vadd.f32 -15.094643, %v464_v58  ;;  %v755_v57 = vadd.f32 %v1358_v6, %v1760_v20 }
 0x120   : > { %v868_v38 = vmul.f32 %v852_v22, %v1804_v9  ;;  %v869_v16 = vmul.f32 %v853_v27, %v1808_v53  ;;  %v513_v30 = vadd.f32 42.058693, %v497_v26  ;;  %v770_v31 = vadd.f32 0.5, %v754_v54 }
 0x121   : > { %v514_v7 = vadd.f32 42.058693, %v498_v28  ;;  %v495_v15 = vmul.f32 %v479_v33, %v1816_v25  ;;  %v496_v36 = vmul.f32 %v480_v18, %v1822_v12  ;;  %v771_v23 = vadd.f32 0.5, %v755_v57 }
 0x122   : > { %v884_v32 = vadd.f32 42.058693, %v868_v38  ;;  %v885_v21 = vadd.f32 42.058693, %v869_v16  ;;  %v529_v5 = vmul.f32 %v513_v30, %v1793_v11  ;;  %v786_v45 = vfloor.f32 %v770_v31 }
 0x123   : > { %v530_v59 = vmul.f32 %v514_v7, %v1797_v41  ;;  %v511_v44 = vadd.f32 42.058693, %v495_v15  ;;  %v512_v20 = vadd.f32 42.058693, %v496_v36  ;;  %v787_v24 = vfloor.f32 %v771_v23 }
 0x124   : > { %v900_v34 = vmul.f32 %v884_v32, %v1804_v9  ;;  %v901_v6 = vmul.f32 %v885_v21, %v1808_v53  ;;  %v545_v42 = vadd.f32 -76.70586, %v529_v5  ;;  %v1845_v62 = vsub.f32 %v754_v54, %v786_v45 }
 0x125   : > { %v546_v48 = vadd.f32 -76.70586, %v530_v59  ;;  %v527_v3 = vmul.f32 %v511_v44, %v1816_v25  ;;  %v528_v61 = vmul.f32 %v512_v20, %v1822_v12  ;;  %v1848_v8 = vsub.f32 %v755_v57, %v787_v24 }
 0x126   : > { %v916_v4 = vadd.f32 -76.70586, %v900_v34  ;;  %v917_v60 = vadd.f32 -76.70586, %v901_v6  ;;  %v561_v49 = vmul.f32 %v545_v42, %v1793_v11  ;;  %v1854_v1 = vmul.f32 %v1845_v62, %v1845_v62 }
 0x127   : > { %v562_v40 = vmul.f32 %v546_v48, %v1797_v41  ;;  %v543_v17 = vadd.f32 -76.70586, %v527_v3  ;;  %v544_v39 = vadd.f32 -76.70586, %v528_v61  ;;  %v1860_v51 = vmul.f32 %v1848_v8, %v1848_v8 }
 0x128   : > { %v932_v10 = vmul.f32 %v916_v4, %v1804_v9  ;;  %v933_v14 = vmul.f32 %v917_v60, %v1808_v53  ;;  %v577_v55 = vadd.f32 81.60525, %v561_v49  ;;  %v834_v29 = vmul.f32 3.8199525, %v1854_v1 }
 0x129   : > { %v578_v19 = vadd.f32 81.60525, %v562_v40  ;;  %v559_v56 = vmul.f32 %v543_v17, %v1816_v25  ;;  %v560_v37 = vmul.f32 %v544_v39, %v1822_v12  ;;  %v835_v52 = vmul.f32 3.8199525, %v1860_v51 }
 0x12a   : > { %v948_v50 = vadd.f32 81.60525, %v932_v10  ;;  %v949_v2 = vadd.f32 81.60525, %v933_v14  ;;  %v593_v63 = vmul.f32 %v577_v55, %v1793_v11  ;;  %v850_v58 = vadd.f32 -15.094643, %v834_v29 }
 0x12b   : > { %v594_v22 = vmul.f32 %v578_v19, %v1797_v41  ;;  %v575_v27 = vadd.f32 81.60525, %v559_v56  ;;  %v576_v33 = vadd.f32 81.60525, %v560_v37  ;;  %v851_v54 = vadd.f32 -15.094643, %v835_v52 }
 0x12c   : > { %v964_v26 = vmul.f32 %v948_v50, %v1804_v9  ;;  %v965_v28 = vmul.f32 %v949_v2, %v1808_v53  ;;  %v609_v38 = vadd.f32 -41.3417, %v593_v63  ;;  %v866_v57 = vmul.f32 %v850_v58, %v1854_v1 }
 0x12d   : > { %v610_v16 = vadd.f32 -41.3417, %v594_v22  ;;  %v591_v18 = vmul.f32 %v575_v27, %v1816_v25  ;;  %v592_v15 = vmul.f32 %v576_v33, %v1822_v12  ;;  %v867_v31 = vmul.f32 %v851_v54, %v1860_v51 }
 0x12e   : > { %v980_v30 = vadd.f32 -41.3417, %v964_v26  ;;  %v981_v7 = vadd.f32 -41.3417, %v965_v28  ;;  %v625_v32 = vmul.f32 %v609_v38, %v1793_v11  ;;  %v882_v23 = vadd.f32 42.058693, %v866_v57 }
 0x12f   : > { %v626_v21 = vmul.f32 %v610_v16, %v1797_v41  ;;  %v607_v36 = vadd.f32 -41.3417, %v591_v18  ;;  %v608_v44 = vadd.f32 -41.3417, %v592_v15  ;;  %v883_v45 = vadd.f32 42.058693, %v867_v31 }
 0x130   : > { %v996_v5 = vmul.f32 %v980_v30, %v1804_v9  ;;  %v997_v59 = vmul.f32 %v981_v7, %v1808_v53  ;;  %v641_v34 = vadd.f32 6.2831855, %v625_v32  ;;  %v898_v24 = vmul.f32 %v882_v23, %v1854_v1 }
 0x131   : > { %v642_v6 = vadd.f32 6.2831855, %v626_v21  ;;  %v623_v20 = vmul.f32 %v607_v36, %v1816_v25  ;;  %v624_v41 = vmul.f32 %v608_v44, %v1822_v12  ;;  %v899_v9 = vmul.f32 %v883_v45, %v1860_v51 }
 0x132   : > { %v1012_v42 = vadd.f32 6.2831855, %v996_v5  ;;  %v1013_v11 = vadd.f32 6.2831855, %v997_v59  ;;  %v657_v53 = vmul.f32 %v641_v34, %v1782_v35  ;;  %v914_v4 = vadd.f32 -76.70586, %v898_v24 }
 0x133   : > { %v658_v48 = vmul.f32 %v642_v6, %v1784_v46  ;;  %v639_v3 = vadd.f32 6.2831855, %v623_v20  ;;  %v640_v61 = vadd.f32 6.2831855, %v624_v41  ;;  %v915_v49 = vadd.f32 -76.70586, %v899_v9 }
 0x134   : > { %v1028_v25 = vmul.f32 %v1012_v42, %v1786_v43  ;;  %v1029_v60 = vmul.f32 %v1013_v11, %v1788_v47  ;;  %673 = vst [vmem:[%s1479_s29 + $0x70] sm:$0xff] %v657_v53  ;;  %v930_v40 = vmul.f32 %v914_v4, %v1854_v1 }
 0x135   : > { %674 = vst [vmem:[%s1479_s29 + $0x78] sm:$0xff] %v658_v48  ;;  %v655_v12 = vmul.f32 %v639_v3, %v1799_v13  ;;  %v656_v35 = vmul.f32 %v640_v61, %v1810_v0  ;;  %v931_v46 = vmul.f32 %v915_v49, %v1860_v51 }
 0x136   : > { %1044 = vst [vmem:[%s1479_s29 + $0xf0] sm:$0xff] %v1028_v25  ;;  %1045 = vst [vmem:[%s1479_s29 + $0xf8] sm:$0xff] %v1029_v60  ;;  %v946_v43 = vadd.f32 81.60525, %v930_v40 }
 0x137   : > { %671 = vst [vmem:[%s1479_s29 + $0x60] sm:$0xff] %v655_v12  ;;  %672 = vst [vmem:[%s1479_s29 + $0x68] sm:$0xff] %v656_v35  ;;  %v947_v47 = vadd.f32 81.60525, %v931_v46 }
 0x138   : > { %v962_v17 = vmul.f32 %v946_v43, %v1854_v1 }
 0x139   : > { %v963_v10 = vmul.f32 %v947_v47, %v1860_v51 }
 0x13a   : > { %v978_v14 = vadd.f32 -41.3417, %v962_v17 }
 0x13b   : > { %v979_v13 = vadd.f32 -41.3417, %v963_v10 }
 0x13c   : > { %v994_v39 = vmul.f32 %v978_v14, %v1854_v1 }
 0x13d   : > { %v995_v55 = vmul.f32 %v979_v13, %v1860_v51 }
 0x13e   : > { %v1010_v19 = vadd.f32 6.2831855, %v994_v39 }
 0x13f   : > { %v1011_v0 = vadd.f32 6.2831855, %v995_v55 }
 0x140   : > { %v1026_v56 = vmul.f32 %v1010_v19, %v1845_v62 }
 0x141   : > { %v1027_v29 = vmul.f32 %v1011_v0, %v1848_v8 }
 0x142   : > { %1042 = vst [vmem:[%s1479_s29 + $0xe0] sm:$0xff] %v1026_v56 }
 0x143   : > { %1043 = vst [vmem:[%s1479_s29 + $0xe8] sm:$0xff] %v1027_v29 }
 0x144 PF: > { %s14_s17 = sadd.s32 1, %s1196_s17   ;;  %s1918_s15 = smov %s1192_s16 }
 0x145   : > { %p11_p5 = scmp.ge.s32.totalorder %s14_s17, 4   ;;  %s1919_s16 = smov %s1921_s18 }
 0x147   :  { %13 = sbr.rel (!%p11_p5) target bundleno = 2 (0x2), region = 67 }

</bundles_post_ra>
